<compile_context>
chip_gen: v6e
topology: v6e:2x2x1
jax: 0.10.0
libtpu: 0.0.40
codegen_flags: <defaults>
</compile_context>

<pallas_src>
import types

import jax
import jax.numpy as jnp
from jax.experimental import pallas as pl
from jax.experimental.pallas import tpu as pltpu


_LANE = 128
_MAX_LANE_COLS = 2048            # widest lane-dense last dim we will fold into
_TARGET_BLOCK_BYTES = 4 << 20    # ~4 MiB per block buffer (HBM-streaming sweet spot)
_VMEM_LIMIT_BYTES = 32 << 20     # 4 x 4 MiB buffers + headroom; safe on v5e/v6e/v7x


def _sublane_granule(dtype) -> int:
    """Second-to-last-dim packing granule: 8 rows f32, 16 bf16, 32 int8/fp8."""
    itemsize = jnp.dtype(dtype).itemsize
    return max(8, 32 // max(1, itemsize))


# ---------------------------------------------------------------------------
# DummySub: y = x * 2   (elementwise, HBM-bandwidth-bound)
# ---------------------------------------------------------------------------
def _dummy_sub_kernel(x_ref, o_ref):
    o_ref[...] = x_ref[...] * 2


def _dummy_sub_2d(x2d):
    """Row-tiled, lane-dense x*2 on a 2-D (rows, cols) array with cols % 128 == 0."""
    rows, cols = x2d.shape
    itemsize = jnp.dtype(x2d.dtype).itemsize
    granule = _sublane_granule(x2d.dtype)

    # Byte-targeted tile rows, rounded down to the sublane packing granule.
    target_rows = (_TARGET_BLOCK_BYTES // (cols * itemsize)) // granule * granule
    target_rows = max(granule, target_rows)
    tr = rows if rows <= target_rows else target_rows  # tr % granule == 0 or tr == rows

    n = rows * cols
    cost = pl.CostEstimate(
        flops=n, transcendentals=0, bytes_accessed=2 * n * itemsize
    )

    return pl.pallas_call(
        _dummy_sub_kernel,
        out_shape=jax.ShapeDtypeStruct((rows, cols), x2d.dtype),
        grid=(pl.cdiv(rows, tr),),
        in_specs=[pl.BlockSpec((tr, cols), lambda i: (i, 0))],
        out_specs=pl.BlockSpec((tr, cols), lambda i: (i, 0)),
        compiler_params=pltpu.CompilerParams(
            dimension_semantics=(pltpu.PARALLEL,),
            vmem_limit_bytes=_VMEM_LIMIT_BYTES,
        ),
        cost_estimate=cost,
    )(x2d)


def dummy_sub(x):
    """Pallas equivalent of DummySub.forward (x * 2), any shape/float dtype.

    Note: if the result feeds other XLA ops, letting XLA fuse the *2 into the
    producer/consumer avoids one full HBM round trip; this standalone kernel
    exists to mirror DummySub as an isolated module.
    """
    n = x.size
    if n == 0:
        return x

    flat = x.reshape(-1)
    pad = (-n) % _LANE
    if pad:
        flat = jnp.pad(flat, (0, pad))
    m = flat.shape[0]

    # Widest lane-dense last dim (multiple of 128, up to 2048) that divides m.
    cols = _LANE
    c = _MAX_LANE_COLS
    while c > _LANE:
        if m % c == 0:
            cols = c
            break
        c //= 2

    y = _dummy_sub_2d(flat.reshape(-1, cols)).reshape(-1)
    if pad:
        y = y[:n]
    return y.reshape(x.shape)


# ---------------------------------------------------------------------------
# DummyModel.forward: loss = 0.0 (independent of input_ids / labels)
# ---------------------------------------------------------------------------
class DummyModelPallas:
    """JAX/Pallas port of DummyModel."""

    def __init__(self):
        # No learnable parameters.
        self.sub1 = dummy_sub
        self.sub2 = dummy_sub
        self.config = types.SimpleNamespace(use_cache=True)

    def eval(self):
        pass

    def forward(self, input_ids, labels=None):
        # The reference returns torch.tensor(0.0) unconditionally. A pallas_call
        # here would only add launch + grid-step + DMA overhead, so it is a
        # plain XLA constant.
        del input_ids, labels
        loss = jnp.zeros((), dtype=jnp.float32)
        return types.SimpleNamespace(loss=loss)

    __call__ = forward


if __name__ == "__main__":
    key = jax.random.PRNGKey(0)
    k_ids, k_lab, k_x1, k_x2, k_x4 = jax.random.split(key, 5)

    # (batch, seq) "input_ids" consistent with the LM-style call signature.
    batch, seq = 2, 8
    input_ids = jax.random.randint(k_ids, (batch, seq), 0, 100, dtype=jnp.int32)
    labels = jax.random.randint(k_lab, (batch, seq), 0, 100, dtype=jnp.int32)

    model = DummyModelPallas()
    model.eval()

    out = model(input_ids, labels=labels)
    loss = jax.block_until_ready(out.loss)
    assert loss.shape == () and loss.dtype == jnp.float32
    assert float(loss) == 0.0

    # DummySub x*2 — lane-dense tiled path.
    x1 = jax.random.normal(k_x1, (8, 128), dtype=jnp.float32)
    y1 = jax.block_until_ready(dummy_sub(x1))
    assert jnp.allclose(y1, x1 * 2)

    # DummySub x*2 — multi-dim input folded into a wide lane-dense slab.
    x2 = jax.random.normal(k_x2, (2, 4, 256), dtype=jnp.float32)
    y2 = jax.block_until_ready(dummy_sub(x2))
    assert jnp.allclose(y2, x2 * 2)

    # DummySub x*2 — odd (non-128-multiple) shape via pad + tiled path + slice.
    x3 = jnp.arange(14, dtype=jnp.float32).reshape(2, 7)
    y3 = jax.block_until_ready(dummy_sub(x3))
    assert jnp.allclose(y3, x3 * 2)

    # DummySub x*2 — bf16 (dtype-aware tile granule).
    x4 = jax.random.normal(k_x4, (4, 256), dtype=jnp.bfloat16)
    y4 = jax.block_until_ready(dummy_sub(x4))
    assert jnp.allclose(y4.astype(jnp.float32), x4.astype(jnp.float32) * 2)

    # DummySub x*2 — 0-d scalar.
    x5 = jnp.float32(3.5)
    y5 = jax.block_until_ready(dummy_sub(x5))
    assert y5.shape == () and float(y5) == 7.0

    print("KERNEL_OK")
</pallas_src>

<mosaic_0001>
module attributes {stable_mosaic.version = 11 : i64} {
  func.func @_dummy_sub_kernel(%arg0: i32, %arg1: memref<1x1024xf32, #tpu.memory_space<vmem>>, %arg2: memref<1x1024xf32, #tpu.memory_space<vmem>>) attributes {dimension_semantics = [#tpu.dimension_semantics<parallel>], iteration_bounds = array<i64: 1>, scalar_prefetch = 0 : i64, scratch_operands = 0 : i64, tpu.core_type = #tpu.core_type<tc>, window_params = [{transform_indices = @transform_0, window_bounds = array<i64: 1, 1024>}, {transform_indices = @transform_1, window_bounds = array<i64: 1, 1024>}]} {
    %c0 = arith.constant 0 : index
    %c0_0 = arith.constant 0 : index
    %0 = vector.load %arg1[%c0, %c0_0] : memref<1x1024xf32, #tpu.memory_space<vmem>>, vector<1x1024xf32>
    %cst = arith.constant 2.000000e+00 : f32
    %1 = vector.broadcast %cst : f32 to vector<1x1024xf32>
    %2 = arith.mulf %0, %1 : vector<1x1024xf32>
    %c0_1 = arith.constant 0 : index
    %c0_2 = arith.constant 0 : index
    %3 = vector.load %arg2[%c0_1, %c0_2] : memref<1x1024xf32, #tpu.memory_space<vmem>>, vector<1x1024xf32>
    tpu.vector_store %arg2[%c0_1, %c0_2], %2 {strides = array<i32>} : memref<1x1024xf32, #tpu.memory_space<vmem>>, vector<1x1024xf32>,
    return
  }
  func.func @transform_0(%arg0: i32) -> (i32, i32) {
    %c0_i32 = arith.constant 0 : i32
    %c0_i32_0 = arith.constant 0 : i32
    return %arg0, %c0_i32 : i32, i32
  }
  func.func @transform_1(%arg0: i32) -> (i32, i32) {
    %c0_i32 = arith.constant 0 : i32
    %c0_i32_0 = arith.constant 0 : i32
    return %arg0, %c0_i32 : i32, i32
  }
}

</mosaic_0001>

<bundles_post_ra>
// kernel: tpu_custom_call.1
= control target key start
LH: loop header
LB: loop body
LE: loop exit
PB: predicated region body
PF: predicated region fallthrough
CT: control target
= control target key end

     0   :  { %6 = vsyncpa [#allocation3], 0  ;;  %s103_s0 = inlined_call_operand.hbm [shape: f32[1,1024], index: 0, kind: input, shape index: {}]   ;;  %s104_s1 = inlined_call_operand.hbm [shape: f32[1,1024], index: 1, kind: output, shape index: {}]  }
   0x1   :  { %7 = vsyncpa [#allocation4], 0  ;;  %s85_s6 = smov [#allocation2]  }
   0x2   :  { %s14_s7 = sshll.u32 %s85_s6, 4  ;;  %s15_s7 = int_to_ptr.vmem [resolvable:$true] %s14_s7 }
   0x3   :  { %s49_s8 = scalar_lea.vmem %s15_s7, 128  ;;  %p54_p1 = scmp.lt.s32.totalorder %s15_s7, %s15_s7 }
   0x4   :  { %p50_p0 = scmp.ne.s32.totalorder %s15_s7, %s49_s8  ;;  %p55_p2 = scmp.lt.s32.totalorder %s49_s8, %s49_s8 }
   0x6   :  { %p56_p3 = por %p55_p2, %p54_p1 }
   0x8   :  { %p57_p4 = pnand %p56_p3, %p50_p0 }
   0xa   :  { %60 = shalt.err (!%p57_p4)
}
   0xb   :  { %17 = dma.hbm_to_vmem [thread:$0]  %s103_s0, 128, %s15_s7, [#allocation3]  }
   0xc   :  { %81 = dma.done.wait [#allocation3], 128  }
   0xd   :  { %82 = vsyncadd [#allocation3], 4294967168  ;;  %s86_s11 = smov [#allocation5]   ;;  %v21_v0 = vld [vmem:[#allocation2] sm:$0xff] }
   0xe   :  { %s30_s12 = sshll.u32 %s86_s11, 4  ;;  %v22_v1 = vmul.f32 2.0, %v21_v0  ;;  %s31_s12 = int_to_ptr.vmem [resolvable:$true] %s30_s12 }
   0xf   :  { %s61_s13 = scalar_lea.vmem %s31_s12, 128  ;;  %p66_p6 = scmp.lt.s32.totalorder %s31_s12, %s31_s12 }
  0x10   :  { %23 = vst [vmem:[#allocation5] sm:$0xff] %v22_v1  ;;  %p62_p5 = scmp.ne.s32.totalorder %s31_s12, %s61_s13  ;;  %p67_p7 = scmp.lt.s32.totalorder %s61_s13, %s61_s13 }
  0x12   :  { %p68_p8 = por %p67_p7, %p66_p6 }
  0x14   :  { %p69_p9 = pnand %p68_p8, %p62_p5 }
  0x16   :  { %72 = shalt.err (!%p69_p9)
}
  0x17   :  { %33 = dma.vmem_to_hbm [thread:$0]  %s31_s12, 128, %s104_s1, [#allocation4]  }
  0x18   :  { %83 = dma.done.wait [#allocation4], 128  }
  0x19   :  { %84 = vsyncadd [#allocation4], 4294967168 }
  0x1a   :  { %37 = vsyncpa [#allocation3], 1 }
  0x1b   :  { %38 = vsyncpa [#allocation4], 1 }

</bundles_post_ra>
